<compile_context>
chip_gen: v7x
topology: tpu7x:2x2x1
jax: 0.10.0
libtpu: 0.0.40
codegen_flags: <defaults>
</compile_context>

<pallas_src>
import functools

import jax
import jax.numpy as jnp
from jax.experimental import pallas as pl
from jax.experimental.pallas import tpu as pltpu


def _round_up(n, m):
    return ((n + m - 1) // m) * m


def _cdiv(a, b):
    return -(-a // b)


def _default_act_dtype():
    """bf16 bias+ReLU on chips with a bf16 VPU (v6e/v7x); f32 on v5e and older."""
    try:
        kind = jax.devices()[0].device_kind.lower()
    except Exception:
        return jnp.float32
    if any(tag in kind for tag in ("v2", "v3", "v4", "v5")):
        return jnp.float32
    return jnp.bfloat16


def _vmem_budget_bytes(frac=0.8):
    """~80% of this generation's physical VMEM (v5e/v6e: 128 MiB, v7x: 64 MiB/TC)."""
    try:
        cap = pltpu.get_tpu_info().vmem_capacity_bytes
    except Exception:
        cap = 64 * 1024 * 1024  # conservative fallback (v7x per-TC VMEM)
    return int(cap * frac)


def _choose_block_m(batch, *, block_max=512, min_steps=4):
    """Balanced batch tile: >= min_steps grid steps (pipelining / 2-TC sharding),
    <= block_max rows, multiple of 16 (bf16 sublane packing), low pad waste."""
    steps = max(min_steps, _cdiv(batch, block_max))
    bm = _round_up(_cdiv(batch, steps), 16)
    return max(16, min(bm, _round_up(batch, 16)))


def _vmem_estimate(block_m, d_in_p, h_p, d_out_p, x_isz, w_isz, a_isz, o_isz):
    w = (d_in_p * h_p + h_p * h_p + h_p * d_out_p) * w_isz   # single-buffered weights
    b = (h_p + h_p + d_out_p) * a_isz                        # single-buffered biases
    x_t = 2 * block_m * d_in_p * x_isz                       # double-buffered x tiles
    o_t = 2 * block_m * d_out_p * o_isz                      # double-buffered out tiles
    live = 2 * block_m * h_p * 4                             # live f32 intermediates
    return w + b + x_t + o_t + live


def _mlp_kernel(final_relu, x_ref, w1_ref, b1_ref, w2_ref, b2_ref,
                w3_ref, b3_ref, o_ref):
    cdt = w1_ref.dtype   # MXU operand dtype (bf16)
    adt = b1_ref.dtype   # activation dtype: f32 on v5e, bf16 on v6e/v7x
    # fc1: bf16 x bf16 -> f32 accumulate on the MXU (x cast in-kernel, hidden under MXU)
    h = jnp.dot(x_ref[...].astype(cdt), w1_ref[...],
                preferred_element_type=jnp.float32)
    h = jnp.maximum(h.astype(adt) + b1_ref[...], 0.0)        # bias + ReLU on the VPU
    # fc2
    h = jnp.dot(h.astype(cdt), w2_ref[...], preferred_element_type=jnp.float32)
    h = jnp.maximum(h.astype(adt) + b2_ref[...], 0.0)
    # fc3 (+ optional final ReLU); final bias add kept in f32 for the f32 output
    out = jnp.dot(h.astype(cdt), w3_ref[...], preferred_element_type=jnp.float32)
    out = out + b3_ref[...].astype(jnp.float32)
    if final_relu:
        out = jnp.maximum(out, 0.0)
    o_ref[...] = out.astype(o_ref.dtype)


def prepare_mlp_params(params, *, compute_dtype=jnp.bfloat16, act_dtype=None):
    """One-time preprocessing (hoisted out of the per-call path): pad feature dims to
    lane-dense multiples of 128 and cast weights to the MXU operand dtype, biases to
    the activation dtype. Zero padding is semantics-preserving."""
    if act_dtype is None:
        act_dtype = _default_act_dtype()
    d_in, hidden = params["w1"].shape
    d_out = params["w3"].shape[1]
    d_in_p = _round_up(d_in, 128)
    h_p = _round_up(hidden, 128)
    d_out_p = _round_up(d_out, 128)

    def pad2(a, rows, cols, dtype):
        return jnp.pad(a, ((0, rows - a.shape[0]),
                           (0, cols - a.shape[1]))).astype(dtype)

    return {
        "w1": pad2(params["w1"], d_in_p, h_p, compute_dtype),
        "w2": pad2(params["w2"], h_p, h_p, compute_dtype),
        "w3": pad2(params["w3"], h_p, d_out_p, compute_dtype),
        "b1": pad2(params["b1"], 1, h_p, act_dtype),
        "b2": pad2(params["b2"], 1, h_p, act_dtype),
        "b3": pad2(params["b3"], 1, d_out_p, act_dtype),
        "dims": (d_in, hidden, d_out, d_in_p, h_p, d_out_p),
        "compute_dtype": compute_dtype,
        "act_dtype": act_dtype,
    }


def mlp_pallas(x, prepared, *, final_relu=False, block_m_max=512,
               out_dtype=jnp.float32):
    """x: (B, D_in) float32. `prepared`: output of prepare_mlp_params()."""
    B, D_in = x.shape
    d_in, hidden, d_out, d_in_p, h_p, d_out_p = prepared["dims"]
    assert D_in == d_in, f"x feature dim {D_in} != prepared D_in {d_in}"

    w_isz = jnp.dtype(prepared["compute_dtype"]).itemsize
    a_isz = jnp.dtype(prepared["act_dtype"]).itemsize
    o_isz = jnp.dtype(out_dtype).itemsize
    x_isz = x.dtype.itemsize

    budget = _vmem_budget_bytes()
    block_m = _choose_block_m(B, block_max=block_m_max)
    while block_m > 16 and _vmem_estimate(block_m, d_in_p, h_p, d_out_p,
                                          x_isz, w_isz, a_isz, o_isz) > budget:
        block_m = max(16, _round_up(block_m // 2, 16))
    if _vmem_estimate(block_m, d_in_p, h_p, d_out_p,
                      x_isz, w_isz, a_isz, o_isz) > budget:
        # TODO(synk): add a hidden-dim (K)-tiled fallback with an f32 accumulator and
        # pl.when init/finalize for hidden sizes whose resident weights overflow v7x VMEM.
        raise ValueError("MLP weights too large for VMEM-resident Pallas kernel; "
                         "hidden-dim-tiled fallback not implemented.")

    b_p = _round_up(B, block_m)
    grid = (b_p // block_m,)

    # Only materialize a padded copy of x when actually needed; keep original dtype
    # (the bf16 cast happens inside the kernel, hidden under the MXU).
    if (b_p != B) or (d_in_p != D_in):
        xp = jnp.pad(x, ((0, b_p - B), (0, d_in_p - D_in)))
    else:
        xp = x

    kernel = functools.partial(_mlp_kernel, final_relu)

    def resident(shape):
        # Revisited every grid step with a constant index_map -> no re-DMA; Buffered(1)
        # avoids the default double buffer and halves the resident-weight VMEM footprint.
        return pl.BlockSpec(shape, lambda i: (0, 0), pipeline_mode=pl.Buffered(1))

    out_p = pl.pallas_call(
        kernel,
        out_shape=jax.ShapeDtypeStruct((b_p, d_out_p), out_dtype),
        grid=grid,
        in_specs=[
            pl.BlockSpec((block_m, d_in_p), lambda i: (i, 0)),   # x tile (pipelined)
            resident((d_in_p, h_p)),                             # w1 (VMEM-resident)
            resident((1, h_p)),                                  # b1
            resident((h_p, h_p)),                                # w2
            resident((1, h_p)),                                  # b2
            resident((h_p, d_out_p)),                            # w3
            resident((1, d_out_p)),                              # b3
        ],
        out_specs=pl.BlockSpec((block_m, d_out_p), lambda i: (i, 0)),
        compiler_params=pltpu.CompilerParams(
            dimension_semantics=("parallel",),
            vmem_limit_bytes=budget,
        ),
    )(xp, prepared["w1"], prepared["b1"], prepared["w2"], prepared["b2"],
      prepared["w3"], prepared["b3"])

    return out_p[:B, :d_out]


def init_mlp_params(key, input_size, output_size, hidden_size):
    """Deterministic synthetic init. Weights stored already transposed to (in, out)."""
    ks = jax.random.split(key, 6)
    scale = 0.05
    return {
        "w1": scale * jax.random.normal(ks[0], (input_size, hidden_size), jnp.float32),
        "b1": scale * jax.random.normal(ks[1], (1, hidden_size), jnp.float32),
        "w2": scale * jax.random.normal(ks[2], (hidden_size, hidden_size), jnp.float32),
        "b2": scale * jax.random.normal(ks[3], (1, hidden_size), jnp.float32),
        "w3": scale * jax.random.normal(ks[4], (hidden_size, output_size), jnp.float32),
        "b3": scale * jax.random.normal(ks[5], (1, output_size), jnp.float32),
    }


def mlp_reference(x, p, *, final_relu=False, compute_dtype=jnp.bfloat16,
                  act_dtype=jnp.float32):
    """Pure-JAX reference mirroring the kernel's dtype pipeline
    (bf16-operand / f32-accumulate dots, bias+ReLU in act_dtype)."""
    def dot(a, w):
        return jnp.dot(a.astype(compute_dtype), w.astype(compute_dtype),
                       preferred_element_type=jnp.float32)
    b1 = p["b1"].astype(act_dtype)
    b2 = p["b2"].astype(act_dtype)
    b3 = p["b3"].astype(act_dtype).astype(jnp.float32)
    h = jnp.maximum(dot(x, p["w1"]).astype(act_dtype) + b1, 0.0)
    h = jnp.maximum(dot(h, p["w2"]).astype(act_dtype) + b2, 0.0)
    out = dot(h, p["w3"]) + b3
    return jnp.maximum(out, 0.0) if final_relu else out


def mlp_reference_f32(x, p, *, final_relu=False):
    h = jnp.maximum(x @ p["w1"] + p["b1"], 0.0)
    h = jnp.maximum(h @ p["w2"] + p["b2"], 0.0)
    out = h @ p["w3"] + p["b3"]
    return jnp.maximum(out, 0.0) if final_relu else out


if __name__ == "__main__":
    key = jax.random.PRNGKey(0)
    kx1, kp1, kx2, kp2 = jax.random.split(key, 4)

    # --- Demo 1: lane-dense shapes (multiples of 128); x is passed through unpadded. ---
    B, D_IN, HIDDEN, D_OUT = 256, 128, 256, 128
    x = jax.random.normal(kx1, (B, D_IN), jnp.float32)
    params = init_mlp_params(kp1, D_IN, D_OUT, HIDDEN)
    prepared = prepare_mlp_params(params)

    out = jax.block_until_ready(mlp_pallas(x, prepared, final_relu=False))
    assert out.shape == (B, D_OUT)
    ref = mlp_reference(x, params, final_relu=False,
                        act_dtype=prepared["act_dtype"])
    ref_f32 = mlp_reference_f32(x, params, final_relu=False)
    assert jnp.allclose(out, ref, atol=2e-3, rtol=2e-3)
    assert jnp.allclose(out, ref_f32, atol=5e-2, rtol=5e-2)

    # --- Demo 2: non-aligned ragged shapes exercise the padding path (+ final ReLU). ---
    B2, D_IN2, HIDDEN2, D_OUT2 = 70, 72, 200, 40
    x2 = jax.random.normal(kx2, (B2, D_IN2), jnp.float32)
    params2 = init_mlp_params(kp2, D_IN2, D_OUT2, HIDDEN2)
    prepared2 = prepare_mlp_params(params2)

    out2 = jax.block_until_ready(mlp_pallas(x2, prepared2, final_relu=True))
    assert out2.shape == (B2, D_OUT2)
    ref2 = mlp_reference(x2, params2, final_relu=True,
                         act_dtype=prepared2["act_dtype"])
    assert jnp.allclose(out2, ref2, atol=2e-3, rtol=2e-3)

    print("KERNEL_OK")
</pallas_src>

<mosaic_0001>
module attributes {stable_mosaic.version = 11 : i64} {
  func.func @_mlp_kernel(%arg0: i32, %arg1: memref<64x128xf32, #tpu.memory_space<vmem>>, %arg2: memref<128x256xbf16, #tpu.memory_space<vmem>>, %arg3: memref<1x256xbf16, #tpu.memory_space<vmem>>, %arg4: memref<256x256xbf16, #tpu.memory_space<vmem>>, %arg5: memref<1x256xbf16, #tpu.memory_space<vmem>>, %arg6: memref<256x128xbf16, #tpu.memory_space<vmem>>, %arg7: memref<1x128xbf16, #tpu.memory_space<vmem>>, %arg8: memref<64x128xf32, #tpu.memory_space<vmem>>) attributes {dimension_semantics = [#tpu.dimension_semantics<parallel>], iteration_bounds = array<i64: 4>, scalar_prefetch = 0 : i64, scratch_operands = 0 : i64, tpu.core_type = #tpu.core_type<tc>, window_params = [{transform_indices = @transform_0, window_bounds = array<i64: 64, 128>}, {pipeline_mode = #tpu.pipeline_mode<synchronous>, transform_indices = @transform_1, window_bounds = array<i64: 128, 256>}, {pipeline_mode = #tpu.pipeline_mode<synchronous>, transform_indices = @transform_2, window_bounds = array<i64: 1, 256>}, {pipeline_mode = #tpu.pipeline_mode<synchronous>, transform_indices = @transform_3, window_bounds = array<i64: 256, 256>}, {pipeline_mode = #tpu.pipeline_mode<synchronous>, transform_indices = @transform_4, window_bounds = array<i64: 1, 256>}, {pipeline_mode = #tpu.pipeline_mode<synchronous>, transform_indices = @transform_5, window_bounds = array<i64: 256, 128>}, {pipeline_mode = #tpu.pipeline_mode<synchronous>, transform_indices = @transform_6, window_bounds = array<i64: 1, 128>}, {transform_indices = @transform_7, window_bounds = array<i64: 64, 128>}]} {
    %c0 = arith.constant 0 : index
    %c0_0 = arith.constant 0 : index
    %0 = vector.load %arg1[%c0, %c0_0] : memref<64x128xf32, #tpu.memory_space<vmem>>, vector<64x128xf32>
    %1 = arith.truncf %0 : vector<64x128xf32> to vector<64x128xbf16>
    %c0_1 = arith.constant 0 : index
    %c0_2 = arith.constant 0 : index
    %2 = vector.load %arg2[%c0_1, %c0_2] : memref<128x256xbf16, #tpu.memory_space<vmem>>, vector<128x256xbf16>
    %cst = arith.constant dense<0.000000e+00> : vector<64x256xf32>
    %3 = tpu.matmul %1, %2, %cst {dimension_numbers = #tpu.dot_dimension_numbers<[1], [0], [0], [1], [0, 0, 1, 1], [], []>} : vector<64x128xbf16>, vector<128x256xbf16>, vector<64x256xf32> -> vector<64x256xf32>
    %4 = arith.truncf %3 : vector<64x256xf32> to vector<64x256xbf16>
    %c0_3 = arith.constant 0 : index
    %c0_4 = arith.constant 0 : index
    %5 = vector.load %arg3[%c0_3, %c0_4] : memref<1x256xbf16, #tpu.memory_space<vmem>>, vector<1x256xbf16>
    %6 = vector.broadcast %5 : vector<1x256xbf16> to vector<64x256xbf16>
    %7 = arith.addf %4, %6 : vector<64x256xbf16>
    %cst_5 = arith.constant 0.000000e+00 : bf16
    %8 = vector.broadcast %cst_5 : bf16 to vector<64x256xbf16>
    %9 = arith.maximumf %7, %8 : vector<64x256xbf16>
    %c0_6 = arith.constant 0 : index
    %c0_7 = arith.constant 0 : index
    %10 = vector.load %arg4[%c0_6, %c0_7] : memref<256x256xbf16, #tpu.memory_space<vmem>>, vector<256x256xbf16>
    %cst_8 = arith.constant dense<0.000000e+00> : vector<64x256xf32>
    %11 = tpu.matmul %9, %10, %cst_8 {dimension_numbers = #tpu.dot_dimension_numbers<[1], [0], [0], [1], [0, 0, 1, 1], [], []>} : vector<64x256xbf16>, vector<256x256xbf16>, vector<64x256xf32> -> vector<64x256xf32>
    %12 = arith.truncf %11 : vector<64x256xf32> to vector<64x256xbf16>
    %c0_9 = arith.constant 0 : index
    %c0_10 = arith.constant 0 : index
    %13 = vector.load %arg5[%c0_9, %c0_10] : memref<1x256xbf16, #tpu.memory_space<vmem>>, vector<1x256xbf16>
    %14 = vector.broadcast %13 : vector<1x256xbf16> to vector<64x256xbf16>
    %15 = arith.addf %12, %14 : vector<64x256xbf16>
    %cst_11 = arith.constant 0.000000e+00 : bf16
    %16 = vector.broadcast %cst_11 : bf16 to vector<64x256xbf16>
    %17 = arith.maximumf %15, %16 : vector<64x256xbf16>
    %c0_12 = arith.constant 0 : index
    %c0_13 = arith.constant 0 : index
    %18 = vector.load %arg6[%c0_12, %c0_13] : memref<256x128xbf16, #tpu.memory_space<vmem>>, vector<256x128xbf16>
    %cst_14 = arith.constant dense<0.000000e+00> : vector<64x128xf32>
    %19 = tpu.matmul %17, %18, %cst_14 {dimension_numbers = #tpu.dot_dimension_numbers<[1], [0], [0], [1], [0, 0, 1, 1], [], []>} : vector<64x256xbf16>, vector<256x128xbf16>, vector<64x128xf32> -> vector<64x128xf32>
    %c0_15 = arith.constant 0 : index
    %c0_16 = arith.constant 0 : index
    %20 = vector.load %arg7[%c0_15, %c0_16] : memref<1x128xbf16, #tpu.memory_space<vmem>>, vector<1x128xbf16>
    %21 = arith.extf %20 : vector<1x128xbf16> to vector<1x128xf32>
    %22 = vector.broadcast %21 : vector<1x128xf32> to vector<64x128xf32>
    %23 = arith.addf %19, %22 : vector<64x128xf32>
    %c0_17 = arith.constant 0 : index
    %c0_18 = arith.constant 0 : index
    %24 = vector.load %arg8[%c0_17, %c0_18] : memref<64x128xf32, #tpu.memory_space<vmem>>, vector<64x128xf32>
    tpu.vector_store %arg8[%c0_17, %c0_18], %23 {strides = array<i32>} : memref<64x128xf32, #tpu.memory_space<vmem>>, vector<64x128xf32>,
    return
  }
  func.func @transform_0(%arg0: i32) -> (i32, i32) {
    %c0_i32 = arith.constant 0 : i32
    %c0_i32_0 = arith.constant 0 : i32
    return %arg0, %c0_i32 : i32, i32
  }
  func.func @transform_1(%arg0: i32) -> (i32, i32) {
    %c0_i32 = arith.constant 0 : i32
    %c0_i32_0 = arith.constant 0 : i32
    %c0_i32_1 = arith.constant 0 : i32
    return %c0_i32, %c0_i32_0 : i32, i32
  }
  func.func @transform_2(%arg0: i32) -> (i32, i32) {
    %c0_i32 = arith.constant 0 : i32
    %c0_i32_0 = arith.constant 0 : i32
    %c0_i32_1 = arith.constant 0 : i32
    return %c0_i32, %c0_i32_0 : i32, i32
  }
  func.func @transform_3(%arg0: i32) -> (i32, i32) {
    %c0_i32 = arith.constant 0 : i32
    %c0_i32_0 = arith.constant 0 : i32
    %c0_i32_1 = arith.constant 0 : i32
    return %c0_i32, %c0_i32_0 : i32, i32
  }
  func.func @transform_4(%arg0: i32) -> (i32, i32) {
    %c0_i32 = arith.constant 0 : i32
    %c0_i32_0 = arith.constant 0 : i32
    %c0_i32_1 = arith.constant 0 : i32
    return %c0_i32, %c0_i32_0 : i32, i32
  }
  func.func @transform_5(%arg0: i32) -> (i32, i32) {
    %c0_i32 = arith.constant 0 : i32
    %c0_i32_0 = arith.constant 0 : i32
    %c0_i32_1 = arith.constant 0 : i32
    return %c0_i32, %c0_i32_0 : i32, i32
  }
  func.func @transform_6(%arg0: i32) -> (i32, i32) {
    %c0_i32 = arith.constant 0 : i32
    %c0_i32_0 = arith.constant 0 : i32
    %c0_i32_1 = arith.constant 0 : i32
    return %c0_i32, %c0_i32_0 : i32, i32
  }
  func.func @transform_7(%arg0: i32) -> (i32, i32) {
    %c0_i32 = arith.constant 0 : i32
    %c0_i32_0 = arith.constant 0 : i32
    return %arg0, %c0_i32 : i32, i32
  }
}

</mosaic_0001>

<bundles_post_ra>
// kernel: tpu_custom_call.1
= control target key start
LH: loop header
LB: loop body
LE: loop exit
PB: predicated region body
PF: predicated region fallthrough
CT: control target
= control target key end

     0   :  { %12 = vsyncpa [#allocation3], 0  ;;  %s2114_s0 = inlined_call_operand.hbm [shape: f32[256,128], index: 0, kind: input, shape index: {}]   ;;  %s2115_s1 = inlined_call_operand.hbm [shape: bf16[128,256], index: 1, kind: input, shape index: {}]   ;;  %s2116_s2 = inlined_call_operand.vmem [shape: bf16[1,256], index: 2, kind: input, shape index: {}]   ;;  %s2117_s3 = inlined_call_operand.hbm [shape: bf16[256,256], index: 3, kind: input, shape index: {}]   ;;  %s2118_s4 = inlined_call_operand.vmem [shape: bf16[1,256], index: 4, kind: input, shape index: {}]   ;;  %s2119_s5 = inlined_call_operand.hbm [shape: bf16[256,128], index: 5, kind: input, shape index: {}]   ;;  %s2120_s6 = inlined_call_operand.vmem [shape: bf16[1,128], index: 6, kind: input, shape index: {}]   ;;  %s2121_s7 = inlined_call_operand.hbm [shape: f32[256,128], index: 7, kind: output, shape index: {}]  }
   0x1   :  { %14 = vsyncpa [#allocation3 + $0x1], 0 }
   0x2   :  { %15 = vsyncpa [#allocation6], 0 }
   0x3   :  { %16 = vsyncpa [#allocation9], 0 }
   0x4   :  { %17 = vsyncpa [#allocation4], 0 }
   0x5   :  { %19 = vsyncpa [#allocation4 + $0x1], 0  ;;  %s1781_s24 = smov 0   ;;  %s1783_s25 = smov 0  }
   0x6   :  { %s1785_s26 = smov 0   ;;  %s1787_s27 = smov 0  }
   0x7 LB: > { %s1802_s28 = sadd.s32 4294967295, %s1726_s27   ;;  %s1237_s29 = sadd.s32 4294967294, %s1726_s27   ;;  %s1726_s27 = sphi %s1787_s27, %s2146_s27   ;;  %s1722_s26 = sphi %s1785_s26, %s2145_s26   ;;  %s1718_s25 = sphi %s1783_s25, %s2144_s25   ;;  %s1714_s24 = sphi %s1781_s24, %s2143_s24  }
   0x8   : > { %p45_p0 = scmp.ne.s32.totalorder %s1718_s25, %s1714_s24  ;;  %p2122_p1 = scmp.eq.s32.totalorder %s1802_s28, 0 }
   0x9   : > { %p201_p3 = scmp.eq.s32.totalorder %s1237_s29, 3  ;;  %p1238_p5 = scmp.ge.s32.totalorder %s1726_s27, 1 }
   0xa   : > { %p1811_p4 = por %p2122_p1, %p45_p0  ;;  %p208_p7 = scmp.lt.s32.totalorder %s1726_s27, 5 }
   0xb   : > { %p1816_p6 = por %p201_p3, %p45_p0  ;;  %s1728_s10 = smov [#allocation5]  }
   0xc   : > { %s2126_s30 = scalar_select %p1811_p4, 1, 0 }
   0xd   : > { %s2127_s8 = scalar_select %p1816_p6, 1, 0 }
   0xe   : > { %p1821_p8 = pnand %p1238_p5, %p208_p7  ;;  %s220_s11 = sshll.u32 %s1728_s10, 4  ;;  %s1825_s11 = int_to_ptr.vmem [resolvable:$true] %s220_s11 }
   0xf   : > { %2128 = sst [smem:[#allocation15_spill]] %s2127_s8  ;;  %s1729_s13 = smov [#allocation7]  }
  0x10   : > { %s2129_s9 = scalar_select %p1821_p8, 1, 0 }
  0x11   : > { %p1381_p9 = pneg %p1821_p8  ;;  %s236_s14 = sshll.u32 %s1729_s13, 4  ;;  %s1835_s14 = int_to_ptr.vmem [resolvable:$true] %s236_s14 }
  0x12   : > { %s1730_s15 = smov [#allocation8]   ;;  %s1538_s19 = scalar_lea.hbm %s2115_s1, 2048 }
  0x13   : > { %p1831_p10 = pnand %p1381_p9, %p2122_p1  ;;  %s1837_s16 = sshll.u32 %s1730_s15, 4  ;;  %s253_s16 = int_to_ptr.vmem [resolvable:$true] %s1837_s16 }
  0x14   : > { %p1539_p11 = scmp.ne.s32.totalorder %s2115_s1, %s1538_s19  ;;  %p1545_p3 = scmp.lt.u32.totalorder %s1538_s19, %s2115_s1 }
  0x15   : > { %p1847_p12 = pneg %p1831_p10 }
  0x17   : > { %p1541_p13 = pnand %p1847_p12, %p1539_p11 }
  0x19   : > { %p1542_p0 = pneg %p1541_p13 }
  0x1b   : > { %p1547_p5 = pnand %p1545_p3, %p1542_p0 }
  0x1d   : > { %1550 = shalt.err (!%p1547_p5)
}
  0x1e   : > { %s1551_s10 = scalar_lea.vmem %s1825_s11, 2048  ;;  %p1559_p2 = scmp.lt.s32.totalorder %s1825_s11, %s1825_s11 }
  0x1f   : > { %p1552_p7 = scmp.ne.s32.totalorder %s1825_s11, %s1551_s10  ;;  %p1560_p6 = scmp.lt.s32.totalorder %s1551_s10, %s1551_s10 }
  0x21   : > { %p1554_p9 = pnand %p1552_p7, %p1847_p12  ;;  %p1561_p11 = por %p1560_p6, %p1559_p2 }
  0x23   : > { %p1555_p1 = pneg %p1554_p9 }
  0x25   : > { %p1562_p13 = pnand %p1561_p11, %p1555_p1 }
  0x27   : > { %1565 = shalt.err (!%p1562_p13)
}
  0x28   : > { %s1731_s13 = smov 128   ;;  %s1732_s15 = smov 8  }
  0x29   : > { %1384 = dma.hbm_to_vmem [thread:$0]  (!%p1831_p10), %s2115_s1, 2048, %s1825_s11, [#allocation6], %s1731_s13, %s1731_s13, %s1732_s15  }
  0x2a   : > { %s1566_s21 = scalar_lea.hbm %s2117_s3, 4096 }
  0x2b   : > { %p1567_p1 = scmp.ne.s32.totalorder %s2117_s3, %s1566_s21  ;;  %p1573_p0 = scmp.lt.u32.totalorder %s1566_s21, %s2117_s3 }
  0x2d   : > { %p1569_p2 = pnand %p1567_p1, %p1847_p12 }
  0x2f   : > { %p1570_p6 = pneg %p1569_p2 }
  0x31   : > { %p1575_p3 = pnand %p1573_p0, %p1570_p6 }
  0x33   : > { %1578 = shalt.err (!%p1575_p3)
}
  0x34   : > { %s1579_s11 = scalar_lea.vmem %s1835_s14, 4096  ;;  %p1587_p11 = scmp.lt.s32.totalorder %s1835_s14, %s1835_s14 }
  0x35   : > { %p1580_p5 = scmp.ne.s32.totalorder %s1835_s14, %s1579_s11  ;;  %p1588_p13 = scmp.lt.s32.totalorder %s1579_s11, %s1579_s11 }
  0x37   : > { %p1582_p7 = pnand %p1580_p5, %p1847_p12  ;;  %p1589_p1 = por %p1588_p13, %p1587_p11 }
  0x39   : > { %p1583_p9 = pneg %p1582_p7 }
  0x3b   : > { %p1590_p2 = pnand %p1589_p1, %p1583_p9 }
  0x3d   : > { %1593 = shalt.err (!%p1590_p2)
}
  0x3e   : > { %1387 = dma.hbm_to_vmem [thread:$0]  (!%p1831_p10), %s2117_s3, 4096, %s1835_s14, [#allocation6], %s1731_s13, %s1731_s13, %s1732_s15  }
  0x3f   : > { %s1594_s20 = scalar_lea.hbm %s2119_s5, 2048 }
  0x40   : > { %p1595_p6 = scmp.ne.s32.totalorder %s2119_s5, %s1594_s20  ;;  %p1601_p5 = scmp.lt.u32.totalorder %s1594_s20, %s2119_s5 }
  0x42   : > { %p1597_p0 = pnand %p1595_p6, %p1847_p12 }
  0x44   : > { %p1598_p3 = pneg %p1597_p0 }
  0x46   : > { %p1603_p7 = pnand %p1601_p5, %p1598_p3 }
  0x48   : > { %1606 = shalt.err (!%p1603_p7)
}
  0x49   : > { %s1607_s11 = scalar_lea.vmem %s253_s16, 2048  ;;  %p1615_p1 = scmp.lt.s32.totalorder %s253_s16, %s253_s16 }
  0x4a   : > { %p1608_p9 = scmp.ne.s32.totalorder %s253_s16, %s1607_s11  ;;  %p1616_p2 = scmp.lt.s32.totalorder %s1607_s11, %s1607_s11 }
  0x4c   : > { %p1610_p11 = pnand %p1608_p9, %p1847_p12  ;;  %p1617_p4 = por %p1616_p2, %p1615_p1 }
  0x4e   : > { %p1611_p13 = pneg %p1610_p11 }
  0x50   : > { %p1618_p8 = pnand %p1617_p4, %p1611_p13 }
  0x52   : > { %1621 = shalt.err (!%p1618_p8)
}
  0x53   : > { %s1733_s14 = smov 64   ;;  %s1734_s22 = smov 4  }
  0x54   : > { %1390 = dma.hbm_to_vmem [thread:$0]  (!%p1831_p10), %s2119_s5, 2048, %s253_s16, [#allocation9], %s1733_s14, %s1733_s14, %s1734_s22  }
  0x55   : > { %s1917_s18 = sadd.s32 1, %s1726_s27   ;;  %s32_s20 = sadd.s32 1, %s1722_s26 }
  0x56   : > { %s29_s19 = ssub.s32 %s1726_s27, %s1917_s18  ;;  %p39_p8 = scmp.ne.s32.totalorder %s1722_s26, %s1718_s25 }
  0x57   : > { %p30_p4 = scmp.eq.s32.totalorder %s29_s19, 0  ;;  %p40_p12 = scmp.eq.s32.totalorder %s1726_s27, 0 }
  0x58   : > { %p1402_p6 = scmp.lt.s32.totalorder %s1726_s27, 4  ;;  %p2132_p3 = scmp.eq.s32.totalorder %s1802_s28, 3 }
  0x59   : > { %s1927_s21 = scalar_select %p30_p4, %s1722_s26, %s32_s20  }
  0x5a   : > { %p41_p0 = por %p40_p12, %p39_p8  ;;  %p1931_p5 = por %p2132_p3, %p39_p8 }
  0x5b   : > { %s269_s12 = sand.u32 1, %s1722_s26   ;;  %s1323_s29 = sshll.u32 %s1726_s27, 10 }
  0x5c   : > { %s1243_s16 = sshll.u32 %s269_s12, 6  ;;  %s1940_s14 = scalar_lea.hbm %s2114_s0, %s1323_s29 }
  0x5d   : > { %s273_s22 = scalar_lea.vmem [#allocation2], %s1243_s16  ;;  %p1942_p10 = pnand %p1402_p6, %p41_p0 }
  0x5e   : > { %s280_s8 = sshll.u32 %s273_s22, 4  ;;  %s1948_s19 = scalar_lea.sflag [#allocation3], %s269_s12  ;;  %s1946_s8 = int_to_ptr.vmem [resolvable:$true] %s280_s8 }
  0x5f   : > { %s1622_s20 = scalar_lea.hbm %s1940_s14, 1024  ;;  %p1624_p9 = pneg %p1942_p10 }
  0x60   : > { %p1623_p7 = scmp.ne.s32.totalorder %s1940_s14, %s1622_s20  ;;  %s1627_s10 = scalar_lea.hbm %s2114_s0, 4096 }
  0x61   : > { %p1628_p1 = scmp.lt.u32.totalorder %s1940_s14, %s2114_s0  ;;  %p1629_p2 = scmp.lt.u32.totalorder %s1627_s10, %s1622_s20 }
  0x62   : > { %p1625_p11 = pnand %p1624_p9, %p1623_p7  ;;  %p1631_p8 = scmp.lt.u32.totalorder %s1622_s20, %s1940_s14 }
  0x63   : > { %p1630_p4 = por %p1629_p2, %p1628_p1 }
  0x64   : > { %p1626_p13 = pneg %p1625_p11 }
  0x65   : > { %p1632_p12 = por %p1631_p8, %p1630_p4 }
  0x67   : > { %p1633_p6 = pnand %p1632_p12, %p1626_p13 }
  0x69   : > { %1636 = shalt.err (!%p1633_p6)
}
  0x6a   : > { %s1637_s12 = scalar_lea.vmem %s1946_s8, 1024  ;;  %s1735_s29 = smov [#allocation2]  }
  0x6b   : > { %p1638_p0 = scmp.ne.s32.totalorder %s1946_s8, %s1637_s12  ;;  %s1642_s16 = sshll.u32 %s1735_s29, 4  ;;  %s1643_s16 = int_to_ptr.vmem [resolvable:$false] %s1642_s16 }
  0x6c   : > { %s1644_s11 = scalar_lea.vmem %s1643_s16, 2048  ;;  %p1645_p11 = scmp.lt.s32.totalorder %s1946_s8, %s1643_s16 }
  0x6d   : > { %p1640_p3 = pnand %p1638_p0, %p1624_p9  ;;  %p1646_p1 = scmp.lt.s32.totalorder %s1644_s11, %s1637_s12 }
  0x6f   : > { %p1641_p7 = pneg %p1640_p3  ;;  %p1647_p2 = por %p1646_p1, %p1645_p11 }
  0x71   : > { %p1648_p4 = pnand %p1647_p2, %p1641_p7 }
  0x73   : > { %1651 = shalt.err (!%p1648_p4)
}
  0x74   : > { %1394 = dma.hbm_to_vmem [thread:$0]  (!%p1942_p10), %s1940_s14, 1024, %s1946_s8, %s1948_s19, %s1731_s13, %s1731_s13, %s1732_s15  }
  0x75   : > { %p2135_p9 = scmp.ne.s32.totalorder %s2129_s9, 0 }
  0x76   : > { %s1982_s20 = sand.u32 (!%p2135_p9), 1, %s1718_s25   ;;  %p2136_p13 = scmp.ne.s32.totalorder (!%p2135_p9), %s2126_s30, 0 }
  0x77   : > { %292 = sbr.rel (%p2135_p9) target bundleno = 869 (0x365), region = 48  ;;  %s1247_s10 = sshll.u32 (!%p2135_p9), %s1982_s20, 6 }
  0x78   : > { %s295_s22 = scalar_lea.sflag (!%p2135_p9), [#allocation3], %s1982_s20  ;;  %s1988_s17 = scalar_lea.vmem (!%p2135_p9), [#allocation2], %s1247_s10 }
  0x7e   : > { %1697 = dma.done.wait (%p2136_p13), %s295_s22, 1024  }
  0x7f   : > { %1699 = vsyncadd (%p2136_p13), %s295_s22, 4294966272  ;;  %p2137_p10 = scmp.eq.s32.totalorder %s1802_s28, 0 }
  0x81   : > { %1701 = dma.done.wait (%p2137_p10), [#allocation6], 6144   ;;  %p2138_p8 = pmov %p2137_p10 }
  0x83   : > { %1703 = vsyncadd (%p2138_p8), [#allocation6], 4294961152  ;;  %p2139_p12 = pmov %p2138_p8 }
  0x84   : > { %p2140_p6 = pmov %p2138_p8 }
  0x85   : > { %1705 = dma.done.wait (%p2139_p12), [#allocation9], 2048  }
  0x86   : > { %1707 = vsyncadd (%p2140_p6), [#allocation9], 4294965248  ;;  %v1736_v0 = vmov 0   ;;  %v1450_v1 = vld [vmem:[#allocation5 + $0x4] ss:$8 sps:$4 sm:$0xff]   ;;  %v346_v33 = vld [vmem:[%s1988_s17 + $0x10] sm:$0xff] }
  0x87   : > { %484 = vmatprep.mubr.bf16.mxu0 %v1736_v0  ;;  %v1452_v2 = vld [vmem:[#allocation5] ss:$8 sps:$4 sm:$0xff]   ;;  %452 = vmatprep.subr.bf16.mxu0 %v1450_v1  ;;  %v1453_v3 = vld [vmem:[#allocation5 + $0x14] ss:$8 sps:$4 sm:$0xff]   ;;  %v1455_v4 = vld [vmem:[#allocation5 + $0x10] ss:$8 sps:$4 sm:$0xff]  }
  0x88   : > { %453 = vmatpush1.bf16.msra.mxu0 %v1452_v2  ;;  %v1456_v5 = vld [vmem:[#allocation5 + $0x24] ss:$8 sps:$4 sm:$0xff]   ;;  %v1458_v6 = vld [vmem:[#allocation5 + $0x20] ss:$8 sps:$4 sm:$0xff]   ;;  %v1459_v7 = vld [vmem:[#allocation5 + $0x34] ss:$8 sps:$4 sm:$0xff]  }
  0x89   : > { %454 = vmatprep.subr.bf16.mxu0 %v1453_v3  ;;  %v1461_v8 = vld [vmem:[#allocation5 + $0x30] ss:$8 sps:$4 sm:$0xff]   ;;  %v1462_v9 = vld [vmem:[#allocation5 + $0x44] ss:$8 sps:$4 sm:$0xff]   ;;  %v1476_v11 = vld [vmem:[#allocation7] ss:$8 sps:$4 sm:$0xff]  }
  0x8a   : > { %v1474_v10 = vld [vmem:[#allocation7 + $0x4] ss:$8 sps:$4 sm:$0xff]   ;;  %v1464_v12 = vld [vmem:[#allocation5 + $0x40] ss:$8 sps:$4 sm:$0xff]   ;;  %v1477_v13 = vld [vmem:[#allocation7 + $0x14] ss:$8 sps:$4 sm:$0xff]  }
  0x8b   : > { %v1465_v14 = vld [vmem:[#allocation5 + $0x54] ss:$8 sps:$4 sm:$0xff]   ;;  %779 = vmatprep.subr.bf16.mxu1 %v1474_v10  ;;  %v1479_v15 = vld [vmem:[#allocation7 + $0x10] ss:$8 sps:$4 sm:$0xff]   ;;  %v1480_v16 = vld [vmem:[#allocation7 + $0x24] ss:$8 sps:$4 sm:$0xff]  }
  0x8c   : > { %455 = vmatpush1.bf16.msra.mxu0 %v1455_v4  ;;  %780 = vmatpush1.bf16.msra.mxu1 %v1476_v11  ;;  %v1467_v17 = vld [vmem:[#allocation5 + $0x50] ss:$8 sps:$4 sm:$0xff]   ;;  %v1468_v18 = vld [vmem:[#allocation5 + $0x64] ss:$8 sps:$4 sm:$0xff]   ;;  %v1482_v19 = vld [vmem:[#allocation7 + $0x20] ss:$8 sps:$4 sm:$0xff]  }
  0x8d   : > { %456 = vmatprep.subr.bf16.mxu0 %v1456_v5  ;;  %781 = vmatprep.subr.bf16.mxu1 %v1477_v13  ;;  %v1483_v20 = vld [vmem:[#allocation7 + $0x34] ss:$8 sps:$4 sm:$0xff]   ;;  %v1470_v21 = vld [vmem:[#allocation5 + $0x60] ss:$8 sps:$4 sm:$0xff]   ;;  %v1485_v23 = vld [vmem:[#allocation7 + $0x30] ss:$8 sps:$4 sm:$0xff]  }
  0x8e   : > { %v1471_v22 = vld [vmem:[#allocation5 + $0x74] ss:$8 sps:$4 sm:$0xff]   ;;  %v1473_v24 = vld [vmem:[#allocation5 + $0x70] ss:$8 sps:$4 sm:$0xff]   ;;  %v1486_v25 = vld [vmem:[#allocation7 + $0x44] ss:$8 sps:$4 sm:$0xff]  }
  0x8f   : > { %v344_v26 = vld [vmem:[%s1988_s17] sm:$0xff]  ;;  %v345_v27 = vld [vmem:[%s1988_s17 + $0x8] sm:$0xff]  ;;  %v1489_v30 = vld [vmem:[#allocation7 + $0x54] ss:$8 sps:$4 sm:$0xff]   ;;  %v1737_v10 = vmov 1966171168  }
  0x90   : > { %457 = vmatpush1.bf16.msra.mxu0 %v1458_v6  ;;  %782 = vmatpush1.bf16.msra.mxu1 %v1479_v15  ;;  %v1488_v28 = vld [vmem:[#allocation7 + $0x40] ss:$8 sps:$4 sm:$0xff]   ;;  %v352_v29 = vpack.c.bf16 %v345_v27, %v344_v26  ;;  %v1491_v31 = vld [vmem:[#allocation7 + $0x50] ss:$8 sps:$4 sm:$0xff]   ;;  %v1492_v32 = vld [vmem:[#allocation7 + $0x64] ss:$8 sps:$4 sm:$0xff]   ;;  %v544_v11 = vunpack.c.l.s4 %v1737_v10 }
  0x91   : > { %458 = vmatprep.subr.bf16.mxu0 %v1459_v7  ;;  %783 = vmatprep.subr.bf16.mxu1 %v1480_v16  ;;  %v347_v34 = vld [vmem:[%s1988_s17 + $0x18] sm:$0xff]  ;;  %v1494_v35 = vld [vmem:[#allocation7 + $0x60] ss:$8 sps:$4 sm:$0xff]   ;;  %v1498_v39 = vld [vmem:[#allocation7 + $0x84] ss:$8 sps:$4 sm:$0xff]   ;;  %s2054_s19 = scalar_lea.vmem [#allocation10], %s1247_s10 }
  0x92   : > { %v1495_v36 = vld [vmem:[#allocation7 + $0x74] ss:$8 sps:$4 sm:$0xff]   ;;  %v353_v37 = vpack.c.bf16 %v347_v34, %v346_v33  ;;  %v1497_v38 = vld [vmem:[#allocation7 + $0x70] ss:$8 sps:$4 sm:$0xff]   ;;  %v348_v40 = vld [vmem:[%s1988_s17 + $0x20] sm:$0xff]  ;;  %v545_v13 = vunpack.c.0.s8 %v544_v11  ;;  %s1135_s12 = sshll.u32 %s2054_s19, 4  ;;  %s2064_s12 = int_to_ptr.vmem [resolvable:$true] %s1135_s12 }
  0x93   : > { %v349_v41 = vld [vmem:[%s1988_s17 + $0x28] sm:$0xff]  ;;  %v1501_v44 = vld [vmem:[#allocation7 + $0x94] ss:$8 sps:$4 sm:$0xff]   ;;  %v1503_v45 = vld [vmem:[#allocation7 + $0x90] ss:$8 sps:$4 sm:$0xff]   ;;  %s1324_s29 = sshll.u32 %s1802_s28, 10 }
  0x94   : > { %459 = vmatpush1.bf16.msra.mxu0 %v1461_v8  ;;  %784 = vmatpush1.bf16.msra.mxu1 %v1482_v19  ;;  %v1500_v42 = vld [vmem:[#allocation7 + $0x80] ss:$8 sps:$4 sm:$0xff]   ;;  %v354_v43 = vpack.c.bf16 %v349_v41, %v348_v40  ;;  %v1504_v46 = vld [vmem:[#allocation7 + $0xa4] ss:$8 sps:$4 sm:$0xff]   ;;  %v350_v47 = vld [vmem:[%s1988_s17 + $0x30] sm:$0xff]  ;;  %s2069_s10 = scalar_lea.hbm %s2121_s7, %s1324_s29  ;;  %s1122_s22 = scalar_lea.sflag [#allocation4], %s1982_s20 }
  0x95   : > { %460 = vmatprep.subr.bf16.mxu0 %v1462_v9  ;;  %785 = vmatprep.subr.bf16.mxu1 %v1483_v20  ;;  %v351_v48 = vld [vmem:[%s1988_s17 + $0x38] sm:$0xff]  ;;  %v1506_v49 = vld [vmem:[#allocation7 + $0xa0] ss:$8 sps:$4 sm:$0xff]   ;;  %v1510_v53 = vld [vmem:[#allocation7 + $0xc4] ss:$8 sps:$4 sm:$0xff]   ;;  %s1652_s17 = scalar_lea.vmem %s2064_s12, 1024 }
  0x96   : > { %v355_v50 = vpack.c.bf16 %v351_v48, %v350_v47  ;;  %v1507_v51 = vld [vmem:[#allocation7 + $0xb4] ss:$8 sps:$4 sm:$0xff]   ;;  %v1509_v52 = vld [vmem:[#allocation7 + $0xb0] ss:$8 sps:$4 sm:$0xff]   ;;  %v1512_v54 = vld [vmem:[#allocation7 + $0xc0] ss:$8 sps:$4 sm:$0xff]   ;;  %p1653_p0 = scmp.ne.s32.totalorder %s2064_s12, %s1652_s17 }
  0x97   : > { %v1513_v55 = vld [vmem:[#allocation7 + $0xd4] ss:$8 sps:$4 sm:$0xff]   ;;  %v1515_v56 = vld [vmem:[#allocation7 + $0xd0] ss:$8 sps:$4 sm:$0xff]   ;;  %v1516_v57 = vld [vmem:[#allocation7 + $0xe4] ss:$8 sps:$4 sm:$0xff]  }
  0x98   : > { %461 = vmatpush1.bf16.msra.mxu0 %v1464_v12  ;;  %786 = vmatpush1.bf16.msra.mxu1 %v1485_v23  ;;  %v1518_v58 = vld [vmem:[#allocation7 + $0xe0] ss:$8 sps:$4 sm:$0xff]   ;;  %v1519_v59 = vld [vmem:[#allocation7 + $0xf4] ss:$8 sps:$4 sm:$0xff]   ;;  %v1521_v60 = vld [vmem:[#allocation7 + $0xf0] ss:$8 sps:$4 sm:$0xff]   ;;  %v546_v12 = vlaneseq  ;;  %p1654_p3 = pnand %p1653_p0, %p1931_p5 }
  0x99   : > { %462 = vmatprep.subr.bf16.mxu0 %v1465_v14  ;;  %787 = vmatprep.subr.bf16.mxu1 %v1486_v25  ;;  %v1522_v61 = vld [vmem:[#allocation8 + $0x40] sm:$0xff]   ;;  %v1524_v63 = vld [vmem:[#allocation8 + $0x48] sm:$0xff]   ;;  %v1526_v2 = vld [vmem:[#allocation8 + $0x50] sm:$0xff]   ;;  %s1738_s28 = smov [#allocation10]  }
  0x9a   : > { %v1523_v62 = vld [vmem:[#allocation8] sm:$0xff]   ;;  %v1525_v1 = vld [vmem:[#allocation8 + $0x8] sm:$0xff]   ;;  %v1527_v3 = vld [vmem:[#allocation8 + $0x10] sm:$0xff]   ;;  %v547_v14 = vshrl.u32 %v546_v12, 7  ;;  %p1655_p7 = pneg %p1654_p3  ;;  %s1656_s30 = sshll.u32 %s1738_s28, 4  ;;  %s1657_s30 = int_to_ptr.vmem [resolvable:$false] %s1656_s30 }
  0x9b   : > { %v1528_v4 = vld [vmem:[#allocation8 + $0x58] sm:$0xff]   ;;  %v1530_v6 = vld [vmem:[#allocation8 + $0x60] sm:$0xff]   ;;  %v1532_v8 = vld [vmem:[#allocation8 + $0x68] sm:$0xff]   ;;  %s1658_s9 = scalar_lea.vmem %s1657_s30, 2048  ;;  %p1659_p11 = scmp.lt.s32.totalorder %s2064_s12, %s1657_s30 }
  0x9c   : > { %463 = vmatpush1.bf16.msra.mxu0 %v1467_v17  ;;  %788 = vmatpush1.bf16.msra.mxu1 %v1488_v28  ;;  %v1529_v5 = vld [vmem:[#allocation8 + $0x18] sm:$0xff]   ;;  %v1531_v7 = vld [vmem:[#allocation8 + $0x20] sm:$0xff]   ;;  %v1533_v9 = vld [vmem:[#allocation8 + $0x28] sm:$0xff]   ;;  %v2017_v16 = vsub.s32 %v545_v13, %v547_v14  ;;  %p1660_p1 = scmp.lt.s32.totalorder %s1658_s9, %s1652_s17 }
  0x9d   : > { %464 = vmatprep.subr.bf16.mxu0 %v1468_v18  ;;  %789 = vmatprep.subr.bf16.mxu1 %v1489_v30  ;;  %v1268_v15 = vld.sshfl [vmem:[%s2116_s2] sm:$0x11 pattern:$0x75316420] }
  0x9e   : > { %v542_v17 = vcombine.high %v1268_v15, %v1268_v15  ;;  %v549_v18 = vrot.slane %v1268_v15, %v2017_v16  ;;  %p1661_p2 = por %p1660_p1, %p1659_p11 }
  0xa0   : > { %465 = vmatpush1.bf16.msra.mxu0 %v1470_v21  ;;  %790 = vmatpush1.bf16.msra.mxu1 %v1491_v31  ;;  %v556_v19 = vrot.slane %v542_v17, %v2017_v16  ;;  %v558_v20 = vpack.i.b16 %v549_v18, %v549_v18  ;;  %v2021_v21 = vsub.s32 0, %v547_v14  ;;  %p1662_p4 = pnand %p1661_p2, %p1655_p7 }
  0xa1   : > { %466 = vmatprep.subr.bf16.mxu0 %v1471_v22  ;;  %791 = vmatprep.subr.bf16.mxu1 %v1492_v32 }
  0xa2   : > { %v565_v22 = vpack.i.b16 %v556_v19, %v556_v19  ;;  %v563_v25 = vrot.slane %v558_v20, %v2021_v21 }
  0xa4   : > { %467 = vmatpush1.bf16.msra.mxu0 %v1473_v24  ;;  %792 = vmatpush1.bf16.msra.mxu1 %v1494_v35  ;;  %v570_v27 = vrot.slane %v565_v22, %v2021_v21 }
  0xa5   : > { %793 = vmatprep.subr.bf16.mxu1 %v1495_v36  ;;  %1325 = vmatprep.subr.bf16.mxu0 %v1522_v61 }
  0xa7   : > { %485 = vmatmul.mubr.bf16.vlgmr.msra.gmra.mrb[0].mxu0 %v352_v29 }
  0xa8   : > { %494 = vmatprep.mubr.bf16.mxu0 %v1736_v0  ;;  %794 = vmatpush1.bf16.msra.mxu1 %v1497_v38 }
  0xa9   : > { %795 = vmatprep.subr.bf16.mxu1 %v1498_v39  ;;  %1326 = vmatpush3.bf16.msra.mxu0 %v1523_v62 }
  0xaa   : > { %1327 = vmatprep.subr.bf16.mxu0 %v1524_v63 }
  0xac   : > { %796 = vmatpush1.bf16.msra.mxu1 %v1500_v42 }
  0xad   : > { %797 = vmatprep.subr.bf16.mxu1 %v1501_v44  ;;  %1328 = vmatpush3.bf16.msra.mxu0 %v1525_v1 }
  0xae   : > { %1329 = vmatprep.subr.bf16.mxu0 %v1526_v2  ;;  %v1534_v2 = vld [vmem:[#allocation8 + $0x70] sm:$0xff]  }
  0xaf   : > { %495 = vmatmul.mubr.bf16.gmra.mrb[4].mxu0 %v353_v37 }
  0xb0   : > { %504 = vmatprep.mubr.bf16.mxu0 %v1736_v0  ;;  %798 = vmatpush1.bf16.msra.mxu1 %v1503_v45 }
  0xb1   : > { %799 = vmatprep.subr.bf16.mxu1 %v1504_v46  ;;  %1330 = vmatpush3.bf16.msra.mxu0 %v1527_v3  ;;  %v1535_v3 = vld [vmem:[#allocation8 + $0x30] sm:$0xff]  }
  0xb2   : > { %1331 = vmatprep.subr.bf16.mxu0 %v1528_v4  ;;  %v1536_v4 = vld [vmem:[#allocation8 + $0x78] sm:$0xff]  }
  0xb4   : > { %800 = vmatpush1.bf16.msra.mxu1 %v1506_v49 }
  0xb5   : > { %801 = vmatprep.subr.bf16.mxu1 %v1507_v51  ;;  %1332 = vmatpush3.bf16.msra.mxu0 %v1529_v5  ;;  %v1537_v5 = vld [vmem:[#allocation8 + $0x38] sm:$0xff]  }
  0xb6   : > { %1333 = vmatprep.subr.bf16.mxu0 %v1530_v6  ;;  %v1301_v6 = vld.sshfl [vmem:[%s2118_s4] sm:$0x11 pattern:$0x75316420] }
  0xb7   : > { %505 = vmatmul.mubr.bf16.gmra.mrb[8].mxu0 %v354_v43 }
  0xb8   : > { %514 = vmatprep.mubr.bf16.mxu0 %v1736_v0  ;;  %802 = vmatpush1.bf16.msra.mxu1 %v1509_v52 }
  0xb9   : > { %803 = vmatprep.subr.bf16.mxu1 %v1510_v53  ;;  %1334 = vmatpush3.bf16.msra.mxu0 %v1531_v7  ;;  %v869_v7 = vcombine.high %v1301_v6, %v1301_v6 }
  0xba   : > { %1335 = vmatprep.subr.bf16.mxu0 %v1532_v8  ;;  %v876_v8 = vrot.slane %v1301_v6, %v2017_v16 }
  0xbc   : > { %804 = vmatpush1.bf16.msra.mxu1 %v1512_v54  ;;  %v885_v10 = vpack.i.b16 %v876_v8, %v876_v8 }
  0xbd   : > { %805 = vmatprep.subr.bf16.mxu1 %v1513_v55  ;;  %1336 = vmatpush3.bf16.msra.mxu0 %v1533_v9  ;;  %v883_v9 = vrot.slane %v869_v7, %v2017_v16 }
  0xbe   : > { %1337 = vmatprep.subr.bf16.mxu0 %v1534_v2  ;;  %v890_v14 = vrot.slane %v885_v10, %v2021_v21 }
  0xbf   : > { %515 = vmatmul.mubr.bf16.gmra.mrb[12].mxu0 %v355_v50  ;;  %v892_v11 = vpack.i.b16 %v883_v9, %v883_v9 }
  0xc0   : > { %806 = vmatpush1.bf16.msra.mxu1 %v1515_v56 }
  0xc1   : > { %807 = vmatprep.subr.bf16.mxu1 %v1516_v57  ;;  %1338 = vmatpush3.bf16.msra.mxu0 %v1535_v3  ;;  %v897_v17 = vrot.slane %v892_v11, %v2021_v21 }
  0xc2   : > { %1339 = vmatprep.subr.bf16.mxu0 %v1536_v4 }
  0xc4   : > { %808 = vmatpush1.bf16.msra.mxu1 %v1518_v58 }
  0xc5   : > { %809 = vmatprep.subr.bf16.mxu1 %v1519_v59  ;;  %1340 = vmatpush3.bf16.msra.mxu0 %v1537_v5 }
  0xc8   : > { %810 = vmatpush1.bf16.msra.mxu1 %v1521_v60 }
 0x17a   : > { %v486_v23 = vpop.f32.mrb[0].mxu0 }
 0x17b   : > { %v488_v24 = vpop.f32.mrb[1].mxu0 }
 0x17c   : > { %v490_v26 = vpop.f32.mrb[2].mxu0 }
 0x17d   : > { %v525_v28 = vpack.c.bf16 %v490_v26, %v486_v23  ;;  %v492_v29 = vpop.f32.mrb[3].mxu0 }
 0x17e   : > { %v526_v30 = vpack.c.bf16 %v492_v29, %v488_v24 }
 0x17f   : > { %v571_v31 = vadd.bf16 %v563_v25, %v525_v28 }
 0x180   : > { %v572_v32 = vadd.bf16 %v570_v27, %v526_v30 }
 0x181   : > { %v579_v36 = vmax.bf16 %v1736_v0, %v571_v31 }
 0x182   : > { %v496_v33 = vpop.f32.mrb[4].mxu0  ;;  %v580_v34 = vmax.bf16 %v1736_v0, %v572_v32 }
 0x183   : > { %v498_v35 = vpop.f32.mrb[5].mxu0 }
 0x184   : > { %v500_v37 = vpop.f32.mrb[6].mxu0  ;;  %811 = vmatprep.mubr.bf16.mxu1 %v580_v34 }
 0x185   : > { %v527_v38 = vpack.c.bf16 %v500_v37, %v496_v33  ;;  %v502_v39 = vpop.f32.mrb[7].mxu0  ;;  %812 = vmatmul.mubr.bf16.vlgmr.msra.gmra.mrb[0].mxu1 %v579_v36 }
 0x186   : > { %v528_v40 = vpack.c.bf16 %v502_v39, %v498_v35 }
 0x187   : > { %v573_v41 = vadd.bf16 %v563_v25, %v527_v38 }
 0x188   : > { %v574_v42 = vadd.bf16 %v570_v27, %v528_v40 }
 0x189   : > { %v581_v46 = vmax.bf16 %v1736_v0, %v573_v41 }
 0x18a   : > { %v506_v43 = vpop.f32.mrb[8].mxu0  ;;  %v582_v44 = vmax.bf16 %v1736_v0, %v574_v42 }
 0x18b   : > { %v508_v45 = vpop.f32.mrb[9].mxu0 }
 0x18c   : > { %v510_v47 = vpop.f32.mrb[10].mxu0  ;;  %821 = vmatprep.mubr.bf16.mxu1 %v582_v44 }
 0x18d   : > { %v529_v48 = vpack.c.bf16 %v510_v47, %v506_v43  ;;  %v512_v49 = vpop.f32.mrb[11].mxu0  ;;  %822 = vmatmul.mubr.bf16.gmra.mrb[4].mxu1 %v581_v46 }
 0x18e   : > { %v530_v50 = vpack.c.bf16 %v512_v49, %v508_v45 }
 0x18f   : > { %v575_v51 = vadd.bf16 %v563_v25, %v529_v48 }
 0x190   : > { %v576_v52 = vadd.bf16 %v570_v27, %v530_v50 }
 0x191   : > { %v583_v56 = vmax.bf16 %v1736_v0, %v575_v51 }
 0x192   : > { %v516_v53 = vpop.f32.mrb[12].mxu0  ;;  %v584_v54 = vmax.bf16 %v1736_v0, %v576_v52 }
 0x193   : > { %v518_v55 = vpop.f32.mrb[13].mxu0 }
 0x194   : > { %v520_v57 = vpop.f32.mrb[14].mxu0  ;;  %831 = vmatprep.mubr.bf16.mxu1 %v584_v54 }
 0x195   : > { %v531_v58 = vpack.c.bf16 %v520_v57, %v516_v53  ;;  %v522_v59 = vpop.f32.mrb[15].mxu0  ;;  %832 = vmatmul.mubr.bf16.gmra.mrb[8].mxu1 %v583_v56 }
 0x196   : > { %v532_v60 = vpack.c.bf16 %v522_v59, %v518_v55  ;;  %v946_v55 = vld [vmem:[%s2120_s6] sm:$0x1] }
 0x197   : > { %v577_v61 = vadd.bf16 %v563_v25, %v531_v58  ;;  %v947_v56 = vunpack.c.l.bf16 %v946_v55 }
 0x198   : > { %v578_v62 = vadd.bf16 %v570_v27, %v532_v60 }
 0x199   : > { %v585_v1 = vmax.bf16 %v1736_v0, %v577_v61  ;;  %v951_v58 = vrot.slane %v947_v56, %v2021_v21 }
 0x19a   : > { %v586_v63 = vmax.bf16 %v1736_v0, %v578_v62 }
 0x19c   : > { %841 = vmatprep.mubr.bf16.mxu1 %v586_v63 }
 0x19d   : > { %842 = vmatmul.mubr.bf16.gmra.mrb[12].mxu1 %v585_v1 }
 0x258   : > { %v813_v12 = vpop.f32.mrb[0].mxu1 }
 0x259   : > { %v815_v13 = vpop.f32.mrb[1].mxu1 }
 0x25a   : > { %v817_v15 = vpop.f32.mrb[2].mxu1 }
 0x25b   : > { %v852_v18 = vpack.c.bf16 %v817_v15, %v813_v12  ;;  %v819_v19 = vpop.f32.mrb[3].mxu1 }
 0x25c   : > { %v853_v20 = vpack.c.bf16 %v819_v19, %v815_v13 }
 0x25d   : > { %v898_v22 = vadd.bf16 %v890_v14, %v852_v18 }
 0x25e   : > { %v899_v23 = vadd.bf16 %v897_v17, %v853_v20 }
 0x25f   : > { %v906_v26 = vmax.bf16 %v1736_v0, %v898_v22 }
 0x260   : > { %v823_v24 = vpop.f32.mrb[4].mxu1  ;;  %v907_v25 = vmax.bf16 %v1736_v0, %v899_v23 }
 0x261   : > { %v825_v16 = vpop.f32.mrb[5].mxu1 }
 0x262   : > { %v827_v27 = vpop.f32.mrb[6].mxu1  ;;  %1080 = vmatprep.mubr.bf16.mxu0 %v907_v25 }
 0x263   : > { %v854_v28 = vpack.c.bf16 %v827_v27, %v823_v24  ;;  %v829_v29 = vpop.f32.mrb[7].mxu1  ;;  %1081 = vmatmul.mubr.bf16.vlgmr.msra.gmra.mrb[16].mxu0 %v906_v26 }
 0x264   : > { %v855_v30 = vpack.c.bf16 %v829_v29, %v825_v16 }
 0x265   : > { %v900_v31 = vadd.bf16 %v890_v14, %v854_v28 }
 0x266   : > { %v901_v32 = vadd.bf16 %v897_v17, %v855_v30 }
 0x267   : > { %v908_v36 = vmax.bf16 %v1736_v0, %v900_v31 }
 0x268   : > { %v833_v33 = vpop.f32.mrb[8].mxu1  ;;  %v909_v34 = vmax.bf16 %v1736_v0, %v901_v32 }
 0x269   : > { %v835_v35 = vpop.f32.mrb[9].mxu1 }
 0x26a   : > { %v837_v37 = vpop.f32.mrb[10].mxu1  ;;  %1088 = vmatprep.mubr.bf16.mxu0 %v909_v34 }
 0x26b   : > { %v856_v38 = vpack.c.bf16 %v837_v37, %v833_v33  ;;  %v839_v39 = vpop.f32.mrb[11].mxu1  ;;  %1089 = vmatmul.mubr.bf16.gmra.mrb[20].mxu0 %v908_v36 }
 0x26c   : > { %v857_v40 = vpack.c.bf16 %v839_v39, %v835_v35 }
 0x26d   : > { %v902_v41 = vadd.bf16 %v890_v14, %v856_v38 }
 0x26e   : > { %v903_v42 = vadd.bf16 %v897_v17, %v857_v40 }
 0x26f   : > { %v910_v46 = vmax.bf16 %v1736_v0, %v902_v41 }
 0x270   : > { %v843_v43 = vpop.f32.mrb[12].mxu1  ;;  %v911_v44 = vmax.bf16 %v1736_v0, %v903_v42 }
 0x271   : > { %v845_v45 = vpop.f32.mrb[13].mxu1 }
 0x272   : > { %v847_v47 = vpop.f32.mrb[14].mxu1  ;;  %1096 = vmatprep.mubr.bf16.mxu0 %v911_v44 }
 0x273   : > { %v858_v48 = vpack.c.bf16 %v847_v47, %v843_v43  ;;  %v849_v49 = vpop.f32.mrb[15].mxu1  ;;  %1097 = vmatmul.mubr.bf16.gmra.mrb[24].mxu0 %v910_v46 }
 0x274   : > { %v859_v50 = vpack.c.bf16 %v849_v49, %v845_v45 }
 0x275   : > { %v904_v51 = vadd.bf16 %v890_v14, %v858_v48 }
 0x276   : > { %v905_v52 = vadd.bf16 %v897_v17, %v859_v50 }
 0x277   : > { %v912_v54 = vmax.bf16 %v1736_v0, %v904_v51 }
 0x278   : > { %v913_v53 = vmax.bf16 %v1736_v0, %v905_v52 }
 0x27a   : > { %1104 = vmatprep.mubr.bf16.mxu0 %v913_v53 }
 0x27b   : > { %1105 = vmatmul.mubr.bf16.gmra.mrb[28].mxu0 %v912_v54 }
 0x336   : > { %v1341_v57 = vpop.f32.mrb[16].mxu0 }
 0x337   : > { %v1342_v59 = vpop.f32.mrb[17].mxu0 }
 0x338   : > { %v1343_v60 = vadd.f32 %v1342_v59, %v1341_v57  ;;  %v1344_v61 = vpop.f32.mrb[18].mxu0 }
 0x339   : > { %v1345_v62 = vpop.f32.mrb[19].mxu0 }
 0x33a   : > { %v1083_v63 = vadd.f32 %v1343_v60, %v951_v58  ;;  %v1346_v1 = vadd.f32 %v1345_v62, %v1344_v61 }
 0x33c   : > { %1113 = vst [vmem:[%s2054_s19] sm:$0xff] %v1083_v63  ;;  %v1086_v0 = vadd.f32 %v1346_v1, %v951_v58 }
 0x33e   : > { %1114 = vst [vmem:[%s2054_s19 + $0x8] sm:$0xff] %v1086_v0  ;;  %v1347_v2 = vpop.f32.mrb[20].mxu0 }
 0x33f   : > { %v1348_v3 = vpop.f32.mrb[21].mxu0 }
 0x340   : > { %v1349_v21 = vadd.f32 %v1348_v3, %v1347_v2  ;;  %v1350_v4 = vpop.f32.mrb[22].mxu0 }
 0x341   : > { %v1351_v5 = vpop.f32.mrb[23].mxu0 }
 0x342   : > { %v1091_v6 = vadd.f32 %v1349_v21, %v951_v58  ;;  %v1352_v7 = vadd.f32 %v1351_v5, %v1350_v4 }
 0x344   : > { %1115 = vst [vmem:[%s2054_s19 + $0x10] sm:$0xff] %v1091_v6  ;;  %v1094_v8 = vadd.f32 %v1352_v7, %v951_v58 }
 0x346   : > { %1116 = vst [vmem:[%s2054_s19 + $0x18] sm:$0xff] %v1094_v8  ;;  %v1353_v9 = vpop.f32.mrb[24].mxu0 }
 0x347   : > { %v1354_v10 = vpop.f32.mrb[25].mxu0 }
 0x348   : > { %v1355_v11 = vadd.f32 %v1354_v10, %v1353_v9  ;;  %v1356_v12 = vpop.f32.mrb[26].mxu0 }
 0x349   : > { %v1357_v13 = vpop.f32.mrb[27].mxu0 }
 0x34a   : > { %v1099_v14 = vadd.f32 %v1355_v11, %v951_v58  ;;  %v1358_v15 = vadd.f32 %v1357_v13, %v1356_v12 }
 0x34c   : > { %1117 = vst [vmem:[%s2054_s19 + $0x20] sm:$0xff] %v1099_v14  ;;  %v1102_v17 = vadd.f32 %v1358_v15, %v951_v58 }
 0x34e   : > { %1118 = vst [vmem:[%s2054_s19 + $0x28] sm:$0xff] %v1102_v17  ;;  %v1359_v18 = vpop.f32.mrb[28].mxu0 }
 0x34f   : > { %v1360_v19 = vpop.f32.mrb[29].mxu0 }
 0x350   : > { %v1361_v20 = vadd.f32 %v1360_v19, %v1359_v18  ;;  %v1362_v22 = vpop.f32.mrb[30].mxu0 }
 0x351   : > { %v1363_v23 = vpop.f32.mrb[31].mxu0 }
 0x352   : > { %v1107_v24 = vadd.f32 %v1361_v20, %v951_v58  ;;  %v1364_v25 = vadd.f32 %v1363_v23, %v1362_v22 }
 0x354   : > { %1119 = vst [vmem:[%s2054_s19 + $0x30] sm:$0xff] %v1107_v24  ;;  %v1110_v26 = vadd.f32 %v1364_v25, %v951_v58 }
 0x356   : > { %1120 = vst [vmem:[%s2054_s19 + $0x38] sm:$0xff] %v1110_v26 }
 0x357   : > { %1665 = shalt.err (!%p1662_p4)
}
 0x358   : > { %s1666_s13 = scalar_lea.hbm %s2069_s10, 1024  ;;  %s1670_s8 = scalar_lea.hbm %s2121_s7, 4096 }
 0x359   : > { %p1667_p9 = scmp.ne.s32.totalorder %s2069_s10, %s1666_s13  ;;  %p1671_p8 = scmp.lt.u32.totalorder %s2069_s10, %s2121_s7 }
 0x35a   : > { %p1672_p12 = scmp.lt.u32.totalorder %s1670_s8, %s1666_s13  ;;  %p1674_p0 = scmp.lt.u32.totalorder %s1666_s13, %s2069_s10 }
 0x35b   : > { %p1668_p13 = pnand %p1667_p9, %p1931_p5 }
 0x35c   : > { %p1673_p6 = por %p1672_p12, %p1671_p8 }
 0x35d   : > { %p1669_p10 = pneg %p1668_p13 }
 0x35e   : > { %p1675_p3 = por %p1674_p0, %p1673_p6 }
 0x360   : > { %p1676_p7 = pnand %p1675_p3, %p1669_p10 }
 0x362   : > { %1679 = shalt.err (!%p1676_p7)
}
 0x363   : > { %s1739_s16 = smov 128   ;;  %s1740_s11 = smov 8  }
 0x364   : > { %1379 = dma.vmem_to_hbm [thread:$0]  (%p1931_p5), %s2064_s12, 1024, %s2069_s10, %s1122_s22, %s1739_s16, %s1739_s16, %s1740_s11  }
 0x365 PF: > { %s2141_s17 = sld [smem:[#allocation15_spill]]  ;;  %p1406_p11 = scmp.ge.s32.totalorder %s1726_s27, 2 }
 0x366   : > { %s1150_s28 = sand.u32 1, %s1714_s24  }
 0x367   : > { %s1151_s30 = scalar_lea.sflag [#allocation4], %s1150_s28 }
 0x36b   : > { %p2142_p1 = scmp.ne.s32.totalorder %s2141_s17, 0 }
 0x36d   : > { %p1396_p2 = pnand %p1406_p11, %p2142_p1 }
 0x36f   : > { %1709 = dma.done.wait (!%p1396_p2), %s1151_s30, 1024  }
 0x370   : > { %1711 = vsyncadd (!%p1396_p2), %s1151_s30, 4294966272  ;;  %p22_p4 = scmp.ge.s32.totalorder %s1917_s18, 6   ;;  %s2143_s24 = smov %s1718_s25 }
 0x371   : > { %s2144_s25 = smov %s1722_s26  ;;  %s2145_s26 = smov %s1927_s21 }
 0x372   : > { %s2146_s27 = smov %s1917_s18  ;;  %24 = sbr.rel (!%p22_p4) target bundleno = 7 (0x7), region = 105 }
 0x379   :  { %1156 = vsyncpa [#allocation3], 1 }
 0x37a   :  { %1158 = vsyncpa [#allocation3 + $0x1], 1 }
 0x37b   :  { %1159 = vsyncpa [#allocation6], 1 }
 0x37c   :  { %1160 = vsyncpa [#allocation9], 1 }
 0x37d   :  { %1161 = vsyncpa [#allocation4], 1 }
 0x37e   :  { %1163 = vsyncpa [#allocation4 + $0x1], 1 }

</bundles_post_ra>
